<compile_context>
chip_gen: v7x
topology: tpu7x:2x2x1
jax: 0.10.0
libtpu: 0.0.40
codegen_flags: <defaults>
</compile_context>

<pallas_src>
import jax
import jax.numpy as jnp
from jax.experimental import pallas as pl
from jax.experimental.pallas import tpu as pltpu


def _round_up(x, m):
    return ((x + m - 1) // m) * m


def _actor_mlp_kernel(xl_ref, xs_ref, w1l_ref, w1s_ref, b1_ref,
                      w2_ref, b2_ref, w3_ref, b3_ref, out_ref):
    """Fused 3-layer MLP with the input concat folded into the first matmul.

        h1  = relu(x_low @ W1_low + x_soc @ W1_soc + b1)
        h2  = relu(h1 @ W2 + b2)
        out = tanh(h2 @ W3 + b3)

    MXU operands use the weight dtype (f32 or bf16); accumulation and all
    element-wise ops stay in f32.
    """
    wdt = w1l_ref.dtype

    h1 = jnp.dot(xl_ref[...].astype(wdt), w1l_ref[...],
                 preferred_element_type=jnp.float32)
    h1 = h1 + jnp.dot(xs_ref[...].astype(wdt), w1s_ref[...],
                      preferred_element_type=jnp.float32)
    h1 = jnp.maximum(h1 + b1_ref[...], 0.0)

    h2 = jnp.dot(h1.astype(wdt), w2_ref[...],
                 preferred_element_type=jnp.float32)
    h2 = jnp.maximum(h2 + b2_ref[...], 0.0)

    a = jnp.dot(h2.astype(wdt), w3_ref[...],
                preferred_element_type=jnp.float32)
    out_ref[...] = jnp.tanh(a + b3_ref[...]).astype(out_ref.dtype)


def actor_network_forward(low_dim_states, social_vehicles, packed_params,
                          *, action_size):
    """Mirrors ActorNetwork.forward (social_feature_encoder=None).

    low_dim_states : [B, low_dim]           (f32)
    social_vehicles: [B, N_social, F_social]
    Returns (action [B, action_size], {}).
    """
    B = low_dim_states.shape[0]
    # social_feature = [e.reshape(1, -1) for e in social_vehicles]; cat(., 0)
    x_soc = social_vehicles.reshape(B, -1)
    x_low = low_dim_states

    p = packed_params
    w1l, w1s = p["w1_low"], p["w1_soc"]
    b1, w2, b2, w3, b3 = p["b1"], p["w2"], p["b2"], p["w3"], p["b3"]

    low_dim = w1l.shape[0]
    soc_flat = w1s.shape[0]
    HP = w2.shape[0]          # padded hidden (multiple of 128)
    AP = w3.shape[1]          # padded action (multiple of 128)

    # Batch tile: multiple of 8 (f32 sublane), capped at 256 rows.  Pad the
    # batch up to a tile multiple so every block is (8,128)-legal.
    TB = min(256, _round_up(B, 8))
    B_pad = _round_up(B, TB)
    if B_pad != B:
        pad = B_pad - B
        x_low = jnp.pad(x_low, ((0, pad), (0, 0)))
        x_soc = jnp.pad(x_soc, ((0, pad), (0, 0)))

    def const_spec(arr):
        return pl.BlockSpec(arr.shape, lambda i: (0, 0))

    out = pl.pallas_call(
        _actor_mlp_kernel,
        out_shape=jax.ShapeDtypeStruct((B_pad, AP), jnp.float32),
        grid=(B_pad // TB,),
        in_specs=[
            pl.BlockSpec((TB, low_dim), lambda i: (i, 0)),   # x_low tile
            pl.BlockSpec((TB, soc_flat), lambda i: (i, 0)),  # x_soc tile
            const_spec(w1l), const_spec(w1s), const_spec(b1),
            const_spec(w2), const_spec(b2),
            const_spec(w3), const_spec(b3),
        ],
        out_specs=pl.BlockSpec((TB, AP), lambda i: (i, 0)),  # lane-dense store
        compiler_params=pltpu.CompilerParams(
            dimension_semantics=("parallel",)),
    )(x_low, x_soc, w1l, w1s, b1, w2, b2, w3, b3)

    # Strip batch padding and the 128-lane output padding.
    return out[:B, :action_size], {}


def init_params(key, state_size, hidden_units, action_size):
    """Logical parameters, same shapes as the PyTorch nn.Linear layers
    (weights stored pre-transposed: [in_features, out_features])."""
    k1, k2, k3, k4, k5, k6 = jax.random.split(key, 6)
    s1 = 1.0 / jnp.sqrt(state_size)
    s2 = 1.0 / jnp.sqrt(hidden_units)
    return {
        "w1": jax.random.uniform(k1, (state_size, hidden_units), jnp.float32, -s1, s1),
        "b1": jax.random.uniform(k2, (1, hidden_units), jnp.float32, -s1, s1),
        "w2": jax.random.uniform(k3, (hidden_units, hidden_units), jnp.float32, -s2, s2),
        "b2": jax.random.uniform(k4, (1, hidden_units), jnp.float32, -s2, s2),
        "w3": jax.random.uniform(k5, (hidden_units, action_size), jnp.float32, -s2, s2),
        "b3": jax.random.uniform(k6, (1, action_size), jnp.float32, -s2, s2),
    }


def pack_params(params, low_dim, param_dtype=jnp.float32):
    """Pack logical params into the kernel layout:
       * W1 split row-wise into the low-dim-state and social-feature halves,
       * hidden / action lane dims zero-padded to multiples of 128,
       * weights optionally cast to bf16 (v6e/v7x MXU); biases stay f32 so
         bias-add / ReLU / tanh remain f32 (v5e-friendly)."""
    w1, b1 = params["w1"], params["b1"]
    w2, b2 = params["w2"], params["b2"]
    w3, b3 = params["w3"], params["b3"]
    hidden = w1.shape[1]
    action = w3.shape[1]
    HP = _round_up(hidden, 128)
    AP = _round_up(action, 128)

    def pad2(a, rows, cols):
        return jnp.pad(a, ((0, rows - a.shape[0]), (0, cols - a.shape[1])))

    return {
        "w1_low": pad2(w1[:low_dim], low_dim, HP).astype(param_dtype),
        "w1_soc": pad2(w1[low_dim:], w1.shape[0] - low_dim, HP).astype(param_dtype),
        "b1": pad2(b1, 1, HP),
        "w2": pad2(w2, HP, HP).astype(param_dtype),
        "b2": pad2(b2, 1, HP),
        "w3": pad2(w3, HP, AP).astype(param_dtype),
        "b3": pad2(b3, 1, AP),
    }


if __name__ == "__main__":
    # Small shapes consistent with the module:
    #   low_dim_states: [B, 16], social_vehicles: [B, 4, 4] -> 16 flat feats
    #   => state_size = 32, hidden_units = 32, action_size = 2
    B = 2
    low_dim = 16
    n_social, f_social = 4, 4
    state_size = low_dim + n_social * f_social
    hidden_units = 32
    action_size = 2

    key = jax.random.PRNGKey(0)
    k_low, k_soc, k_par = jax.random.split(key, 3)
    low_dim_states = jax.random.normal(k_low, (B, low_dim), jnp.float32)
    social_vehicles = jax.random.normal(k_soc, (B, n_social, f_social),
                                        jnp.float32)

    logical = init_params(k_par, state_size, hidden_units, action_size)
    # For v6e/v7x throughput use pack_params(..., param_dtype=jnp.bfloat16);
    # the demo keeps f32 (net is tiny, and v5e has no bf16 VPU/EUP).
    packed = pack_params(logical, low_dim, param_dtype=jnp.float32)

    action, aux = actor_network_forward(low_dim_states, social_vehicles,
                                        packed, action_size=action_size)
    action = jax.block_until_ready(action)

    # Reference check in plain JAX on the *logical* (unpadded) parameters.
    state = jnp.concatenate(
        [low_dim_states, social_vehicles.reshape(B, -1)], axis=-1)
    h1 = jnp.maximum(state @ logical["w1"] + logical["b1"], 0.0)
    h2 = jnp.maximum(h1 @ logical["w2"] + logical["b2"], 0.0)
    ref = jnp.tanh(h2 @ logical["w3"] + logical["b3"])

    assert action.shape == (B, action_size)
    assert aux == {}
    assert jnp.allclose(action, ref, atol=1e-5, rtol=1e-5)

    # TODO(synk): social_feature_encoder is None in this configuration; a
    # non-None encoder would need its own kernel feeding x_soc.
    print("KERNEL_OK")
</pallas_src>

<mosaic_0001>
module attributes {stable_mosaic.version = 11 : i64} {
  func.func @_actor_mlp_kernel(%arg0: i32, %arg1: memref<8x16xf32, #tpu.memory_space<vmem>>, %arg2: memref<8x16xf32, #tpu.memory_space<vmem>>, %arg3: memref<16x128xf32, #tpu.memory_space<vmem>>, %arg4: memref<16x128xf32, #tpu.memory_space<vmem>>, %arg5: memref<1x128xf32, #tpu.memory_space<vmem>>, %arg6: memref<128x128xf32, #tpu.memory_space<vmem>>, %arg7: memref<1x128xf32, #tpu.memory_space<vmem>>, %arg8: memref<128x128xf32, #tpu.memory_space<vmem>>, %arg9: memref<1x128xf32, #tpu.memory_space<vmem>>, %arg10: memref<8x128xf32, #tpu.memory_space<vmem>>) attributes {dimension_semantics = [#tpu.dimension_semantics<parallel>], iteration_bounds = array<i64: 1>, scalar_prefetch = 0 : i64, scratch_operands = 0 : i64, tpu.core_type = #tpu.core_type<tc>, window_params = [{transform_indices = @transform_0, window_bounds = array<i64: 8, 16>}, {transform_indices = @transform_1, window_bounds = array<i64: 8, 16>}, {pipeline_mode = #tpu.pipeline_mode<synchronous>, transform_indices = @transform_2, window_bounds = array<i64: 16, 128>}, {pipeline_mode = #tpu.pipeline_mode<synchronous>, transform_indices = @transform_3, window_bounds = array<i64: 16, 128>}, {pipeline_mode = #tpu.pipeline_mode<synchronous>, transform_indices = @transform_4, window_bounds = array<i64: 1, 128>}, {pipeline_mode = #tpu.pipeline_mode<synchronous>, transform_indices = @transform_5, window_bounds = array<i64: 128, 128>}, {pipeline_mode = #tpu.pipeline_mode<synchronous>, transform_indices = @transform_6, window_bounds = array<i64: 1, 128>}, {pipeline_mode = #tpu.pipeline_mode<synchronous>, transform_indices = @transform_7, window_bounds = array<i64: 128, 128>}, {pipeline_mode = #tpu.pipeline_mode<synchronous>, transform_indices = @transform_8, window_bounds = array<i64: 1, 128>}, {transform_indices = @transform_9, window_bounds = array<i64: 8, 128>}]} {
    %c0 = arith.constant 0 : index
    %c0_0 = arith.constant 0 : index
    %0 = vector.load %arg1[%c0, %c0_0] : memref<8x16xf32, #tpu.memory_space<vmem>>, vector<8x16xf32>
    %c0_1 = arith.constant 0 : index
    %c0_2 = arith.constant 0 : index
    %1 = vector.load %arg3[%c0_1, %c0_2] : memref<16x128xf32, #tpu.memory_space<vmem>>, vector<16x128xf32>
    %cst = arith.constant dense<0.000000e+00> : vector<8x128xf32>
    %2 = tpu.matmul %0, %1, %cst {dimension_numbers = #tpu.dot_dimension_numbers<[1], [0], [0], [1], [0, 0, 1, 1], [], []>} : vector<8x16xf32>, vector<16x128xf32>, vector<8x128xf32> -> vector<8x128xf32>
    %c0_3 = arith.constant 0 : index
    %c0_4 = arith.constant 0 : index
    %3 = vector.load %arg2[%c0_3, %c0_4] : memref<8x16xf32, #tpu.memory_space<vmem>>, vector<8x16xf32>
    %c0_5 = arith.constant 0 : index
    %c0_6 = arith.constant 0 : index
    %4 = vector.load %arg4[%c0_5, %c0_6] : memref<16x128xf32, #tpu.memory_space<vmem>>, vector<16x128xf32>
    %cst_7 = arith.constant dense<0.000000e+00> : vector<8x128xf32>
    %5 = tpu.matmul %3, %4, %cst_7 {dimension_numbers = #tpu.dot_dimension_numbers<[1], [0], [0], [1], [0, 0, 1, 1], [], []>} : vector<8x16xf32>, vector<16x128xf32>, vector<8x128xf32> -> vector<8x128xf32>
    %6 = arith.addf %2, %5 : vector<8x128xf32>
    %c0_8 = arith.constant 0 : index
    %c0_9 = arith.constant 0 : index
    %7 = vector.load %arg5[%c0_8, %c0_9] : memref<1x128xf32, #tpu.memory_space<vmem>>, vector<1x128xf32>
    %8 = vector.broadcast %7 : vector<1x128xf32> to vector<8x128xf32>
    %9 = arith.addf %6, %8 : vector<8x128xf32>
    %cst_10 = arith.constant 0.000000e+00 : f32
    %10 = vector.broadcast %cst_10 : f32 to vector<8x128xf32>
    %11 = arith.maximumf %9, %10 : vector<8x128xf32>
    %c0_11 = arith.constant 0 : index
    %c0_12 = arith.constant 0 : index
    %12 = vector.load %arg6[%c0_11, %c0_12] : memref<128x128xf32, #tpu.memory_space<vmem>>, vector<128x128xf32>
    %cst_13 = arith.constant dense<0.000000e+00> : vector<8x128xf32>
    %13 = tpu.matmul %11, %12, %cst_13 {dimension_numbers = #tpu.dot_dimension_numbers<[1], [0], [0], [1], [0, 0, 1, 1], [], []>} : vector<8x128xf32>, vector<128x128xf32>, vector<8x128xf32> -> vector<8x128xf32>
    %c0_14 = arith.constant 0 : index
    %c0_15 = arith.constant 0 : index
    %14 = vector.load %arg7[%c0_14, %c0_15] : memref<1x128xf32, #tpu.memory_space<vmem>>, vector<1x128xf32>
    %15 = vector.broadcast %14 : vector<1x128xf32> to vector<8x128xf32>
    %16 = arith.addf %13, %15 : vector<8x128xf32>
    %cst_16 = arith.constant 0.000000e+00 : f32
    %17 = vector.broadcast %cst_16 : f32 to vector<8x128xf32>
    %18 = arith.maximumf %16, %17 : vector<8x128xf32>
    %c0_17 = arith.constant 0 : index
    %c0_18 = arith.constant 0 : index
    %19 = vector.load %arg8[%c0_17, %c0_18] : memref<128x128xf32, #tpu.memory_space<vmem>>, vector<128x128xf32>
    %cst_19 = arith.constant dense<0.000000e+00> : vector<8x128xf32>
    %20 = tpu.matmul %18, %19, %cst_19 {dimension_numbers = #tpu.dot_dimension_numbers<[1], [0], [0], [1], [0, 0, 1, 1], [], []>} : vector<8x128xf32>, vector<128x128xf32>, vector<8x128xf32> -> vector<8x128xf32>
    %c0_20 = arith.constant 0 : index
    %c0_21 = arith.constant 0 : index
    %21 = vector.load %arg9[%c0_20, %c0_21] : memref<1x128xf32, #tpu.memory_space<vmem>>, vector<1x128xf32>
    %22 = vector.broadcast %21 : vector<1x128xf32> to vector<8x128xf32>
    %23 = arith.addf %20, %22 : vector<8x128xf32>
    %24 = math.tanh %23 : vector<8x128xf32>
    %c0_22 = arith.constant 0 : index
    %c0_23 = arith.constant 0 : index
    %25 = vector.load %arg10[%c0_22, %c0_23] : memref<8x128xf32, #tpu.memory_space<vmem>>, vector<8x128xf32>
    tpu.vector_store %arg10[%c0_22, %c0_23], %24 {strides = array<i32>} : memref<8x128xf32, #tpu.memory_space<vmem>>, vector<8x128xf32>,
    return
  }
  func.func @transform_0(%arg0: i32) -> (i32, i32) {
    %c0_i32 = arith.constant 0 : i32
    %c0_i32_0 = arith.constant 0 : i32
    return %arg0, %c0_i32 : i32, i32
  }
  func.func @transform_1(%arg0: i32) -> (i32, i32) {
    %c0_i32 = arith.constant 0 : i32
    %c0_i32_0 = arith.constant 0 : i32
    return %arg0, %c0_i32 : i32, i32
  }
  func.func @transform_2(%arg0: i32) -> (i32, i32) {
    %c0_i32 = arith.constant 0 : i32
    %c0_i32_0 = arith.constant 0 : i32
    %c0_i32_1 = arith.constant 0 : i32
    return %c0_i32, %c0_i32_0 : i32, i32
  }
  func.func @transform_3(%arg0: i32) -> (i32, i32) {
    %c0_i32 = arith.constant 0 : i32
    %c0_i32_0 = arith.constant 0 : i32
    %c0_i32_1 = arith.constant 0 : i32
    return %c0_i32, %c0_i32_0 : i32, i32
  }
  func.func @transform_4(%arg0: i32) -> (i32, i32) {
    %c0_i32 = arith.constant 0 : i32
    %c0_i32_0 = arith.constant 0 : i32
    %c0_i32_1 = arith.constant 0 : i32
    return %c0_i32, %c0_i32_0 : i32, i32
  }
  func.func @transform_5(%arg0: i32) -> (i32, i32) {
    %c0_i32 = arith.constant 0 : i32
    %c0_i32_0 = arith.constant 0 : i32
    %c0_i32_1 = arith.constant 0 : i32
    return %c0_i32, %c0_i32_0 : i32, i32
  }
  func.func @transform_6(%arg0: i32) -> (i32, i32) {
    %c0_i32 = arith.constant 0 : i32
    %c0_i32_0 = arith.constant 0 : i32
    %c0_i32_1 = arith.constant 0 : i32
    return %c0_i32, %c0_i32_0 : i32, i32
  }
  func.func @transform_7(%arg0: i32) -> (i32, i32) {
    %c0_i32 = arith.constant 0 : i32
    %c0_i32_0 = arith.constant 0 : i32
    %c0_i32_1 = arith.constant 0 : i32
    return %c0_i32, %c0_i32_0 : i32, i32
  }
  func.func @transform_8(%arg0: i32) -> (i32, i32) {
    %c0_i32 = arith.constant 0 : i32
    %c0_i32_0 = arith.constant 0 : i32
    %c0_i32_1 = arith.constant 0 : i32
    return %c0_i32, %c0_i32_0 : i32, i32
  }
  func.func @transform_9(%arg0: i32) -> (i32, i32) {
    %c0_i32 = arith.constant 0 : i32
    %c0_i32_0 = arith.constant 0 : i32
    return %arg0, %c0_i32 : i32, i32
  }
}

</mosaic_0001>

<bundles_post_ra>
// kernel: tpu_custom_call.1
= control target key start
LH: loop header
LB: loop body
LE: loop exit
PB: predicated region body
PF: predicated region fallthrough
CT: control target
= control target key end

     0   :  { %14 = vsyncpa [#allocation3], 0  ;;  %s1030_s0 = inlined_call_operand.hbm [shape: f32[8,16], index: 0, kind: input, shape index: {}]   ;;  %s1031_s1 = inlined_call_operand.hbm [shape: f32[8,16], index: 1, kind: input, shape index: {}]   ;;  %s1032_s2 = inlined_call_operand.hbm [shape: f32[16,128], index: 2, kind: input, shape index: {}]   ;;  %s1033_s3 = inlined_call_operand.hbm [shape: f32[16,128], index: 3, kind: input, shape index: {}]   ;;  %s1034_s4 = inlined_call_operand.vmem [shape: f32[1,128], index: 4, kind: input, shape index: {}]   ;;  %s1035_s5 = inlined_call_operand.hbm [shape: f32[128,128], index: 5, kind: input, shape index: {}]   ;;  %s1036_s6 = inlined_call_operand.vmem [shape: f32[1,128], index: 6, kind: input, shape index: {}]   ;;  %s1037_s7 = inlined_call_operand.hbm [shape: f32[128,128], index: 7, kind: input, shape index: {}]   ;;  %s1038_s8 = inlined_call_operand.vmem [shape: f32[1,128], index: 8, kind: input, shape index: {}]   ;;  %s1039_s9 = inlined_call_operand.hbm [shape: f32[8,128], index: 9, kind: output, shape index: {}]  }
   0x1   :  { %15 = vsyncpa [#allocation6], 0 }
   0x2   :  { %16 = vsyncpa [#allocation9], 0 }
   0x3   :  { %17 = vsyncpa [#allocation12], 0 }
   0x4   :  { %18 = vsyncpa [#allocation4], 0  ;;  %s841_s30 = smov [#allocation5]   ;;  %s677_s13 = scalar_lea.hbm %s1031_s1, 128 }
   0x5   :  { %s35_s10 = sshll.u32 %s841_s30, 4  ;;  %p678_p0 = scmp.ne.s32.totalorder %s1031_s1, %s677_s13  ;;  %s36_s10 = int_to_ptr.vmem [resolvable:$true] %s35_s10 }
   0x6   :  { %p681_p1 = scmp.lt.u32.totalorder %s677_s13, %s1031_s1 }
   0x8   :  { %p683_p2 = pnand %p681_p1, %p678_p0 }
   0xa   :  { %686 = shalt.err (!%p683_p2)
}
   0xb   :  { %s687_s18 = scalar_lea.vmem %s36_s10, 128  ;;  %p692_p4 = scmp.lt.s32.totalorder %s36_s10, %s36_s10 }
   0xc   :  { %p688_p3 = scmp.ne.s32.totalorder %s36_s10, %s687_s18  ;;  %p693_p5 = scmp.lt.s32.totalorder %s687_s18, %s687_s18 }
   0xe   :  { %p694_p6 = por %p693_p5, %p692_p4 }
  0x10   :  { %p695_p7 = pnand %p694_p6, %p688_p3 }
  0x12   :  { %698 = shalt.err (!%p695_p7)
}
  0x13   :  { %38 = dma.hbm_to_vmem [thread:$0]  %s1031_s1, 128, %s36_s10, [#allocation6]  }
  0x14   :  { %s842_s21 = smov [#allocation8]   ;;  %s843_s23 = smov [#allocation2]  }
  0x15   :  { %s56_s22 = sshll.u32 %s842_s21, 4  ;;  %s25_s24 = sshll.u32 %s843_s23, 4  ;;  %s57_s22 = int_to_ptr.vmem [resolvable:$true] %s56_s22  ;;  %s26_s24 = int_to_ptr.vmem [resolvable:$true] %s25_s24 }
  0x16   :  { %s699_s27 = scalar_lea.hbm %s1033_s3, 256 }
  0x17   :  { %p700_p8 = scmp.ne.s32.totalorder %s1033_s3, %s699_s27  ;;  %p703_p9 = scmp.lt.u32.totalorder %s699_s27, %s1033_s3 }
  0x19   :  { %p705_p10 = pnand %p703_p9, %p700_p8 }
  0x1b   :  { %708 = shalt.err (!%p705_p10)
}
  0x1c   :  { %s709_s1 = scalar_lea.vmem %s57_s22, 256  ;;  %p714_p12 = scmp.lt.s32.totalorder %s57_s22, %s57_s22 }
  0x1d   :  { %p710_p11 = scmp.ne.s32.totalorder %s57_s22, %s709_s1  ;;  %p715_p13 = scmp.lt.s32.totalorder %s709_s1, %s709_s1 }
  0x1f   :  { %p716_p0 = por %p715_p13, %p714_p12 }
  0x21   :  { %p717_p1 = pnand %p716_p0, %p710_p11 }
  0x23   :  { %720 = shalt.err (!%p717_p1)
}
  0x24   :  { %s844_s10 = smov 128   ;;  %s845_s12 = smov 8  }
  0x25   :  { %62 = dma.hbm_to_vmem [thread:$0]  %s1033_s3, 256, %s57_s22, [#allocation9], %s844_s10, %s844_s10, %s845_s12  }
  0x26   :  { %s721_s17 = scalar_lea.hbm %s1030_s0, 128 }
  0x27   :  { %p722_p2 = scmp.ne.s32.totalorder %s1030_s0, %s721_s17  ;;  %p725_p3 = scmp.lt.u32.totalorder %s721_s17, %s1030_s0 }
  0x29   :  { %p727_p4 = pnand %p725_p3, %p722_p2 }
  0x2b   :  { %730 = shalt.err (!%p727_p4)
}
  0x2c   :  { %s731_s23 = scalar_lea.vmem %s26_s24, 128  ;;  %p736_p6 = scmp.lt.s32.totalorder %s26_s24, %s26_s24 }
  0x2d   :  { %p732_p5 = scmp.ne.s32.totalorder %s26_s24, %s731_s23  ;;  %p737_p7 = scmp.lt.s32.totalorder %s731_s23, %s731_s23 }
  0x2f   :  { %p738_p8 = por %p737_p7, %p736_p6 }
  0x31   :  { %p739_p9 = pnand %p738_p8, %p732_p5 }
  0x33   :  { %742 = shalt.err (!%p739_p9)
}
  0x34   :  { %28 = dma.hbm_to_vmem [thread:$0]  %s1030_s0, 128, %s26_s24, [#allocation3]  }
  0x35   :  { %s846_s25 = smov [#allocation7]   ;;  %s847_s27 = smov [#allocation10]  }
  0x36   :  { %s44_s26 = sshll.u32 %s846_s25, 4  ;;  %s70_s28 = sshll.u32 %s847_s27, 4  ;;  %s45_s26 = int_to_ptr.vmem [resolvable:$true] %s44_s26  ;;  %s71_s28 = int_to_ptr.vmem [resolvable:$true] %s70_s28 }
  0x37   :  { %s743_s11 = scalar_lea.hbm %s1032_s2, 256 }
  0x38   :  { %p744_p10 = scmp.ne.s32.totalorder %s1032_s2, %s743_s11  ;;  %p747_p11 = scmp.lt.u32.totalorder %s743_s11, %s1032_s2 }
  0x3a   :  { %p749_p12 = pnand %p747_p11, %p744_p10 }
  0x3c   :  { %752 = shalt.err (!%p749_p12)
}
  0x3d   :  { %s753_s0 = scalar_lea.vmem %s45_s26, 256  ;;  %p758_p0 = scmp.lt.s32.totalorder %s45_s26, %s45_s26 }
  0x3e   :  { %p754_p13 = scmp.ne.s32.totalorder %s45_s26, %s753_s0  ;;  %p759_p1 = scmp.lt.s32.totalorder %s753_s0, %s753_s0 }
  0x40   :  { %p760_p2 = por %p759_p1, %p758_p0 }
  0x42   :  { %p761_p3 = pnand %p760_p2, %p754_p13 }
  0x44   :  { %764 = shalt.err (!%p761_p3)
}
  0x45   :  { %50 = dma.hbm_to_vmem [thread:$0]  %s1032_s2, 256, %s45_s26, [#allocation6], %s844_s10, %s844_s10, %s845_s12  }
  0x46   :  { %s765_s19 = scalar_lea.hbm %s1035_s5, 2048 }
  0x47   :  { %p766_p4 = scmp.ne.s32.totalorder %s1035_s5, %s765_s19  ;;  %p769_p5 = scmp.lt.u32.totalorder %s765_s19, %s1035_s5 }
  0x49   :  { %p771_p6 = pnand %p769_p5, %p766_p4 }
  0x4b   :  { %774 = shalt.err (!%p771_p6)
}
  0x4c   :  { %s775_s22 = scalar_lea.vmem %s71_s28, 2048  ;;  %p780_p8 = scmp.lt.s32.totalorder %s71_s28, %s71_s28 }
  0x4d   :  { %p776_p7 = scmp.ne.s32.totalorder %s71_s28, %s775_s22  ;;  %p781_p9 = scmp.lt.s32.totalorder %s775_s22, %s775_s22 }
  0x4f   :  { %p782_p10 = por %p781_p9, %p780_p8 }
  0x51   :  { %p783_p11 = pnand %p782_p10, %p776_p7 }
  0x53   :  { %786 = shalt.err (!%p783_p11)
}
  0x54   :  { %76 = dma.hbm_to_vmem [thread:$0]  %s1035_s5, 2048, %s71_s28, [#allocation9], %s844_s10, %s844_s10, %s845_s12  }
  0x55   :  { %s848_s26 = smov [#allocation11]   ;;  %s787_s11 = scalar_lea.hbm %s1037_s7, 2048 }
  0x56   :  { %s84_s27 = sshll.u32 %s848_s26, 4  ;;  %p788_p12 = scmp.ne.s32.totalorder %s1037_s7, %s787_s11  ;;  %s85_s27 = int_to_ptr.vmem [resolvable:$true] %s84_s27 }
  0x57   :  { %p791_p13 = scmp.lt.u32.totalorder %s787_s11, %s1037_s7 }
  0x59   :  { %p793_p0 = pnand %p791_p13, %p788_p12 }
  0x5b   :  { %796 = shalt.err (!%p793_p0)
}
  0x5c   :  { %s797_s0 = scalar_lea.vmem %s85_s27, 2048  ;;  %p802_p2 = scmp.lt.s32.totalorder %s85_s27, %s85_s27 }
  0x5d   :  { %p798_p1 = scmp.ne.s32.totalorder %s85_s27, %s797_s0  ;;  %p803_p3 = scmp.lt.s32.totalorder %s797_s0, %s797_s0 }
  0x5f   :  { %p804_p4 = por %p803_p3, %p802_p2 }
  0x61   :  { %p805_p5 = pnand %p804_p4, %p798_p1 }
  0x63   :  { %808 = shalt.err (!%p805_p5)
}
  0x64   :  { %90 = dma.hbm_to_vmem [thread:$0]  %s1037_s7, 2048, %s85_s27, [#allocation12], %s844_s10, %s844_s10, %s845_s12  }
  0x65   :  { %831 = dma.done.wait [#allocation3], 128  }
  0x66   :  { %832 = vsyncadd [#allocation3], 4294967168 }
  0x67   :  { %833 = dma.done.wait [#allocation6], 384  }
  0x68   :  { %834 = vsyncadd [#allocation6], 4294966912 }
  0x69   :  { %835 = dma.done.wait [#allocation9], 2304  }
  0x6a   :  { %836 = vsyncadd [#allocation9], 4294964992 }
  0x6b   :  { %837 = dma.done.wait [#allocation12], 2048  }
  0x6c   :  { %838 = vsyncadd [#allocation12], 4294965248  ;;  %v849_v0 = vmov 0.0|0.0   ;;  %vm850_vm0 = vmmov 0   ;;  %v851_v1 = vmov 0.0   ;;  %v115_v2 = vld [vmem:[#allocation8] sm:$0xff] }
  0x6d   :  { %609 = vmatprep.subr.bf16.mxu0 %v849_v0  ;;  %612 = vmatprep.subr.bf16.mxu1 %v849_v0  ;;  %v116_v3 = vld [vmem:[#allocation8 + $0x8] sm:$0xff]  ;;  %v112_v4 = vld [vmem:[#allocation7] sm:$0xff]  ;;  %v113_v6 = vld [vmem:[#allocation7 + $0x8] sm:$0xff]  ;;  %vm117_vm1 = vcmask 130048   ;;  %s852_s17 = smov [#allocation13]  }
  0x6e   :  { %529 = vmatprep.mubr.msk.f32.mxu0 %vm850_vm0, %v851_v1  ;;  %536 = vmatprep.mubr.msk.f32.mxu1 %vm850_vm0, %v851_v1  ;;  %v610_v5 = vpack.c.bf16 %v116_v3, %v115_v2  ;;  %v613_v7 = vpack.c.bf16 %v113_v6, %v112_v4  ;;  %v273_v8 = vld [vmem:[#allocation10] sm:$0xff]  ;;  %v274_v9 = vld [vmem:[#allocation10 + $0x8] sm:$0xff]  ;;  %v114_v10 = vld [vmem:[#allocation5] sm:$0xff]  ;;  %s468_s18 = sshll.u32 %s852_s17, 4  ;;  %s469_s18 = int_to_ptr.vmem [resolvable:$true] %s468_s18 }
  0x6f   :  { %v616_v11 = vpack.c.bf16 %v274_v9, %v273_v8  ;;  %v111_v12 = vld [vmem:[#allocation2] sm:$0xff]  ;;  %v276_v14 = vld [vmem:[#allocation10 + $0x18] sm:$0xff]  ;;  %v277_v16 = vld [vmem:[#allocation10 + $0x20] sm:$0xff]  ;;  %s809_s19 = scalar_lea.vmem %s469_s18, 128  ;;  %p814_p7 = scmp.lt.s32.totalorder %s469_s18, %s469_s18 }
  0x70   :  { %611 = vmatpush3.bf16.msra.mxu0 %v610_v5  ;;  %614 = vmatpush3.bf16.msra.mxu1 %v613_v7  ;;  %v275_v13 = vld [vmem:[#allocation10 + $0x10] sm:$0xff]  ;;  %v278_v17 = vld [vmem:[#allocation10 + $0x28] sm:$0xff]  ;;  %v280_v20 = vld [vmem:[#allocation10 + $0x38] sm:$0xff]  ;;  %p810_p6 = scmp.ne.s32.totalorder %s469_s18, %s809_s19  ;;  %p815_p8 = scmp.lt.s32.totalorder %s809_s19, %s809_s19 }
  0x71   :  { %615 = vmatprep.subr.bf16.mxu0 %v849_v0  ;;  %639 = vmatprep.subr.bf16.mxu1 %v849_v0  ;;  %v619_v15 = vpack.c.bf16 %v276_v14, %v275_v13  ;;  %v622_v18 = vpack.c.bf16 %v278_v17, %v277_v16  ;;  %v279_v19 = vld [vmem:[#allocation10 + $0x30] sm:$0xff]  ;;  %v281_v22 = vld [vmem:[#allocation10 + $0x40] sm:$0xff]  ;;  %v282_v23 = vld [vmem:[#allocation10 + $0x48] sm:$0xff] }
  0x72   :  { %v625_v21 = vpack.c.bf16 %v280_v20, %v279_v19  ;;  %v628_v24 = vpack.c.bf16 %v282_v23, %v281_v22  ;;  %v283_v25 = vld [vmem:[#allocation10 + $0x50] sm:$0xff]  ;;  %v284_v26 = vld [vmem:[#allocation10 + $0x58] sm:$0xff]  ;;  %v285_v28 = vld [vmem:[#allocation10 + $0x60] sm:$0xff]  ;;  %p816_p9 = por %p815_p8, %p814_p7 }
  0x73   :  { %530 = vmatmul.mubr.msk.f32.vlgmr.msra.gmra.mrb[0].mxu0 %vm117_vm1, %v114_v10  ;;  %537 = vmatmul.mubr.msk.f32.vlgmr.msra.gmra.mrb[0].mxu1 %vm117_vm1, %v111_v12  ;;  %v631_v27 = vpack.c.bf16 %v284_v26, %v283_v25  ;;  %v286_v29 = vld [vmem:[#allocation10 + $0x68] sm:$0xff]  ;;  %v287_v31 = vld [vmem:[#allocation10 + $0x70] sm:$0xff]  ;;  %v288_v32 = vld [vmem:[#allocation10 + $0x78] sm:$0xff] }
  0x74   :  { %617 = vmatpush3.bf16.msra.mxu0 %v616_v11  ;;  %571 = vmatprep.mubr.msk.f32.mxu0 %vm850_vm0, %v851_v1  ;;  %v634_v30 = vpack.c.bf16 %v286_v29, %v285_v28  ;;  %v637_v33 = vpack.c.bf16 %v288_v32, %v287_v31  ;;  %v367_v34 = vld [vmem:[#allocation11] sm:$0xff]  ;;  %v368_v35 = vld [vmem:[#allocation11 + $0x8] sm:$0xff]  ;;  %v369_v36 = vld [vmem:[#allocation11 + $0x10] sm:$0xff]  ;;  %p817_p10 = pnand %p816_p9, %p810_p6 }
  0x75   :  { %618 = vmatprep.subr.bf16.mxu0 %v849_v0  ;;  %606 = vmatprep.mubr.msk.f32.mxu1 %vm850_vm0, %v851_v1  ;;  %v640_v37 = vpack.c.bf16 %v368_v35, %v367_v34  ;;  %v370_v38 = vld [vmem:[#allocation11 + $0x18] sm:$0xff]  ;;  %v371_v40 = vld [vmem:[#allocation11 + $0x20] sm:$0xff]  ;;  %v372_v41 = vld [vmem:[#allocation11 + $0x28] sm:$0xff] }
  0x76   :  { %v643_v39 = vpack.c.bf16 %v370_v38, %v369_v36  ;;  %v646_v42 = vpack.c.bf16 %v372_v41, %v371_v40  ;;  %v373_v43 = vld [vmem:[#allocation11 + $0x30] sm:$0xff]  ;;  %v374_v44 = vld [vmem:[#allocation11 + $0x38] sm:$0xff]  ;;  %v375_v46 = vld [vmem:[#allocation11 + $0x40] sm:$0xff] }
  0x77   :  { %641 = vmatpush3.bf16.msra.mxu1 %v640_v37  ;;  %v649_v45 = vpack.c.bf16 %v374_v44, %v373_v43  ;;  %v376_v47 = vld [vmem:[#allocation11 + $0x48] sm:$0xff]  ;;  %v377_v49 = vld [vmem:[#allocation11 + $0x50] sm:$0xff]  ;;  %v378_v50 = vld [vmem:[#allocation11 + $0x58] sm:$0xff] }
  0x78   :  { %620 = vmatpush3.bf16.msra.mxu0 %v619_v15  ;;  %642 = vmatprep.subr.bf16.mxu1 %v849_v0  ;;  %v652_v48 = vpack.c.bf16 %v376_v47, %v375_v46  ;;  %v655_v51 = vpack.c.bf16 %v378_v50, %v377_v49  ;;  %v379_v52 = vld [vmem:[#allocation11 + $0x60] sm:$0xff]  ;;  %v380_v53 = vld [vmem:[#allocation11 + $0x68] sm:$0xff]  ;;  %v482_v57 = vld [vmem:[%s1034_s4] ss:$0 sm:$0xff] }
  0x79   :  { %621 = vmatprep.subr.bf16.mxu0 %v849_v0  ;;  %v658_v54 = vpack.c.bf16 %v380_v53, %v379_v52  ;;  %v381_v63 = vld [vmem:[#allocation11 + $0x70] sm:$0xff]  ;;  %v382_v1 = vld [vmem:[#allocation11 + $0x78] sm:$0xff] }
  0x7a   :  { %v661_v2 = vpack.c.bf16 %v382_v1, %v381_v63  ;;  %v484_v7 = vld [vmem:[%s1038_s8] ss:$0 sm:$0xff] }
  0x7b   :  { %644 = vmatpush3.bf16.msra.mxu1 %v643_v39 }
  0x7c   :  { %623 = vmatpush3.bf16.msra.mxu0 %v622_v18  ;;  %645 = vmatprep.subr.bf16.mxu1 %v849_v0 }
  0x7d   :  { %624 = vmatprep.subr.bf16.mxu0 %v849_v0 }
  0x7f   :  { %647 = vmatpush3.bf16.msra.mxu1 %v646_v42 }
  0x80   :  { %626 = vmatpush3.bf16.msra.mxu0 %v625_v21  ;;  %648 = vmatprep.subr.bf16.mxu1 %v849_v0 }
  0x81   :  { %627 = vmatprep.subr.bf16.mxu0 %v849_v0 }
  0x83   :  { %650 = vmatpush3.bf16.msra.mxu1 %v649_v45 }
  0x84   :  { %629 = vmatpush3.bf16.msra.mxu0 %v628_v24  ;;  %651 = vmatprep.subr.bf16.mxu1 %v849_v0 }
  0x85   :  { %630 = vmatprep.subr.bf16.mxu0 %v849_v0 }
  0x87   :  { %653 = vmatpush3.bf16.msra.mxu1 %v652_v48 }
  0x88   :  { %632 = vmatpush3.bf16.msra.mxu0 %v631_v27  ;;  %654 = vmatprep.subr.bf16.mxu1 %v849_v0 }
  0x89   :  { %633 = vmatprep.subr.bf16.mxu0 %v849_v0 }
  0x8b   :  { %656 = vmatpush3.bf16.msra.mxu1 %v655_v51 }
  0x8c   :  { %635 = vmatpush3.bf16.msra.mxu0 %v634_v30  ;;  %657 = vmatprep.subr.bf16.mxu1 %v849_v0 }
  0x8d   :  { %636 = vmatprep.subr.bf16.mxu0 %v849_v0 }
  0x8f   :  { %659 = vmatpush3.bf16.msra.mxu1 %v658_v54 }
  0x90   :  { %638 = vmatpush3.bf16.msra.mxu0 %v637_v33  ;;  %660 = vmatprep.subr.bf16.mxu1 %v849_v0  ;;  %v483_v0 = vld [vmem:[%s1036_s6] ss:$0 sm:$0xff] }
  0x93   :  { %662 = vmatpush3.bf16.msra.mxu1 %v661_v2 }
 0x146   :  { %v187_v55 = vpop.f32.mrb[0].mxu0  ;;  %v260_v56 = vpop.f32.mrb[0].mxu1 }
 0x147   :  { %v531_v58 = vpop.f32.mrb[1].mxu0  ;;  %v261_v59 = vadd.f32 %v260_v56, %v187_v55  ;;  %v538_v60 = vpop.f32.mrb[1].mxu1 }
 0x149   :  { %v271_v61 = vadd.f32 %v482_v57, %v261_v59 }
 0x14b   :  { %v272_v62 = vmax.f32 %v271_v61, 0.0 }
 0x14d   :  { %572 = vmatmul.mubr.f32.vlgmr.msra.gmra.mrb[2].mxu0 %v272_v62 }
 0x220   :  { %v362_v3 = vpop.f32.mrb[2].mxu0 }
 0x221   :  { %v363_v4 = vadd.f32 %v483_v0, %v362_v3  ;;  %v573_v5 = vpop.f32.mrb[3].mxu0 }
 0x223   :  { %v366_v6 = vmax.f32 %v363_v4, 0.0 }
 0x225   :  { %607 = vmatmul.mubr.f32.vlgmr.msra.gmra.mrb[2].mxu1 %v366_v6 }
 0x2f8   :  { %v456_v8 = vpop.f32.mrb[2].mxu1 }
 0x2f9   :  { %v457_v9 = vadd.f32 %v484_v7, %v456_v8  ;;  %v608_v10 = vpop.f32.mrb[3].mxu1 }
 0x2fb   :  { %675 = vtanh.f32 %v457_v9 }
 0x305   :  { %v676_v11 = vpop.eup %675 }
 0x306   :  { %461 = vst [vmem:[#allocation13] sm:$0xff] %v676_v11 }
 0x307   :  { %820 = shalt.err (!%p817_p10)
}
 0x308   :  { %s821_s8 = scalar_lea.hbm %s1039_s9, 128 }
 0x309   :  { %p822_p11 = scmp.ne.s32.totalorder %s1039_s9, %s821_s8  ;;  %p825_p12 = scmp.lt.u32.totalorder %s821_s8, %s1039_s9 }
 0x30b   :  { %p827_p13 = pnand %p825_p12, %p822_p11 }
 0x30d   :  { %830 = shalt.err (!%p827_p13)
}
 0x30e   :  { %471 = dma.vmem_to_hbm [thread:$0]  %s469_s18, 128, %s1039_s9, [#allocation4]  }
 0x30f   :  { %839 = dma.done.wait [#allocation4], 128  }
 0x310   :  { %840 = vsyncadd [#allocation4], 4294967168 }
 0x311   :  { %475 = vsyncpa [#allocation3], 1 }
 0x312   :  { %476 = vsyncpa [#allocation6], 1 }
 0x313   :  { %477 = vsyncpa [#allocation9], 1 }
 0x314   :  { %478 = vsyncpa [#allocation12], 1 }
 0x315   :  { %479 = vsyncpa [#allocation4], 1 }

</bundles_post_ra>
